<compile_context>
chip_gen: v5e
topology: v5e:2x2
jax: 0.10.0
libtpu: 0.0.40
codegen_flags: <defaults>
</compile_context>

<pallas_src>
import functools

import jax
import jax.numpy as jnp
from jax.experimental import pallas as pl
from jax.experimental.pallas import tpu as pltpu

F32 = jnp.float32
BF16 = jnp.bfloat16
VMEM_LIMIT = 48 * 1024 * 1024   # v7x-safe (64 MiB physical), fine on v5e/v6e


def _layernorm(x, g, b, eps=1e-5):
    mu = jnp.mean(x, axis=-1, keepdims=True)
    var = jnp.mean(jnp.square(x - mu), axis=-1, keepdims=True)
    return (x - mu) * jax.lax.rsqrt(var + eps) * g + b


# ----------------------------------------------------------------------------
# Fused variance predictor: conv1+ReLU+LN1+conv2+ReLU+LN2+linear+mask per batch
# ----------------------------------------------------------------------------
def _vp_kernel(xp_ref, w1_ref, b1_ref, g1_ref, be1_ref,
               w2_ref, b2_ref, g2_ref, be2_ref,
               lw_ref, lb_ref, rmask_ref, o_ref, hpad_ref, *, K, T, eps):
    pad = (K - 1) // 2
    Fdim = w1_ref.shape[-1]
    xp = xp_ref[0].astype(BF16)                       # (T+2p, H)

    acc = jnp.zeros((T, Fdim), F32)
    for k in range(K):                                # shifted-accumulate conv1
        acc = acc + jnp.dot(xp[k:k + T, :], w1_ref[k],
                            preferred_element_type=F32)
    h = jnp.maximum(acc + b1_ref[...], 0.0)
    h = _layernorm(h, g1_ref[...], be1_ref[...], eps)

    hpad_ref[...] = jnp.zeros_like(hpad_ref)          # zero halo
    hpad_ref[pad:pad + T, :] = h

    acc2 = jnp.zeros((T, Fdim), F32)
    for k in range(K):                                # conv2
        acc2 = acc2 + jnp.dot(hpad_ref[k:k + T, :].astype(BF16), w2_ref[k],
                              preferred_element_type=F32)
    h2 = jnp.maximum(acc2 + b2_ref[...], 0.0)
    h2 = _layernorm(h2, g2_ref[...], be2_ref[...], eps)

    out = jnp.dot(h2.astype(BF16), lw_ref[...],
                  preferred_element_type=F32) + lb_ref[...]
    o_ref[0] = out * (1.0 - rmask_ref[0])             # masked_fill(pad, 0)


def pallas_variance_predictor(x, p, rmask, K):
    B, T, H = x.shape
    pad = (K - 1) // 2
    Fdim = p["w1"].shape[-1]
    xp = jnp.pad(x, ((0, 0), (pad, pad), (0, 0)))
    kern = functools.partial(_vp_kernel, K=K, T=T, eps=1e-5)
    out = pl.pallas_call(
        kern,
        grid=(B,),
        in_specs=[
            pl.BlockSpec((1, T + 2 * pad, H), lambda b: (b, 0, 0)),
            pl.BlockSpec((K, H, Fdim), lambda b: (0, 0, 0)),
            pl.BlockSpec((1, Fdim), lambda b: (0, 0)),
            pl.BlockSpec((1, Fdim), lambda b: (0, 0)),
            pl.BlockSpec((1, Fdim), lambda b: (0, 0)),
            pl.BlockSpec((K, Fdim, Fdim), lambda b: (0, 0, 0)),
            pl.BlockSpec((1, Fdim), lambda b: (0, 0)),
            pl.BlockSpec((1, Fdim), lambda b: (0, 0)),
            pl.BlockSpec((1, Fdim), lambda b: (0, 0)),
            pl.BlockSpec((Fdim, 1), lambda b: (0, 0)),
            pl.BlockSpec((1, 1), lambda b: (0, 0)),
            pl.BlockSpec((1, T, 1), lambda b: (b, 0, 0)),
        ],
        out_specs=pl.BlockSpec((1, T, 1), lambda b: (b, 0, 0)),
        out_shape=jax.ShapeDtypeStruct((B, T, 1), F32),
        scratch_shapes=[pltpu.VMEM((T + 2 * pad, Fdim), F32)],
        compiler_params=pltpu.CompilerParams(
            dimension_semantics=("parallel",),
            vmem_limit_bytes=VMEM_LIMIT),
    )(xp, p["w1"], p["b1"], p["ln1_g"], p["ln1_b"],
      p["w2"], p["b2"], p["ln2_g"], p["ln2_b"],
      p["lin_w"], p["lin_b"], rmask)
    return out[..., 0]


# ----------------------------------------------------------------------------
# Fused multi-head self-attention block (QKV proj + attn + out proj + res + LN)
# ----------------------------------------------------------------------------
def _mha_body(x, wqkv_ref, bqkv_ref, fcw_ref, fcb_ref, g_ref, be_ref,
              kmask_ref, rmask_ref, o_ref, n_head, d_k, d_v, eps):
    T = x.shape[0]
    H = fcw_ref.shape[-1]
    qkv = jnp.dot(x.astype(BF16), wqkv_ref[...],
                  preferred_element_type=F32) + bqkv_ref[...]
    neg = kmask_ref[0] * (-1e9)                       # (1, T) additive key mask
    scale = 1.0 / (d_k ** 0.5)

    y = jnp.zeros((T, H), F32)
    for h in range(n_head):                           # out-proj accumulated per
        q = qkv[:, h * d_k:(h + 1) * d_k]             # head -> no concat
        k = qkv[:, n_head * d_k + h * d_k: n_head * d_k + (h + 1) * d_k]
        v = qkv[:, 2 * n_head * d_k + h * d_v: 2 * n_head * d_k + (h + 1) * d_v]
        s = jax.lax.dot_general(q.astype(BF16), k.astype(BF16),
                                (((1,), (1,)), ((), ())),
                                preferred_element_type=F32) * scale + neg
        s = s - jnp.max(s, axis=-1, keepdims=True)
        p = jnp.exp(s)
        p = p * pl.reciprocal(jnp.sum(p, axis=-1, keepdims=True), approx=True)
        ctx = jnp.dot(p.astype(BF16), v.astype(BF16),
                      preferred_element_type=F32)
        y = y + jnp.dot(ctx.astype(BF16), fcw_ref[h * d_v:(h + 1) * d_v, :],
                        preferred_element_type=F32)

    y = y + fcb_ref[...]
    y = _layernorm(y + x, g_ref[...], be_ref[...], eps)
    o_ref[0] = y * (1.0 - rmask_ref[0])               # fused pad-mask zeroing


def _mha_kernel(x_ref, wqkv_ref, bqkv_ref, fcw_ref, fcb_ref, g_ref, be_ref,
                kmask_ref, rmask_ref, o_ref, *, n_head, d_k, d_v, eps):
    _mha_body(x_ref[0], wqkv_ref, bqkv_ref, fcw_ref, fcb_ref, g_ref, be_ref,
              kmask_ref, rmask_ref, o_ref, n_head, d_k, d_v, eps)


def _mha_pos_kernel(x_ref, pos_ref, wqkv_ref, bqkv_ref, fcw_ref, fcb_ref,
                    g_ref, be_ref, kmask_ref, rmask_ref, o_ref,
                    *, n_head, d_k, d_v, eps):
    # Positional encoding fused into the first decoder layer (residual includes
    # it, matching dec_output = enc_seq + position_enc in the reference).
    _mha_body(x_ref[0] + pos_ref[...], wqkv_ref, bqkv_ref, fcw_ref, fcb_ref,
              g_ref, be_ref, kmask_ref, rmask_ref, o_ref, n_head, d_k, d_v, eps)


def pallas_mha(x, p, kmask, rmask, n_head, d_k, d_v, pos=None):
    B, T, H = x.shape
    qkv_n = p["wqkv"].shape[1]
    has_pos = pos is not None
    kern = functools.partial(_mha_pos_kernel if has_pos else _mha_kernel,
                             n_head=n_head, d_k=d_k, d_v=d_v, eps=1e-5)

    in_specs = [pl.BlockSpec((1, T, H), lambda b: (b, 0, 0))]
    args = [x]
    if has_pos:
        in_specs.append(pl.BlockSpec((T, H), lambda b: (0, 0)))
        args.append(pos)
    in_specs += [
        pl.BlockSpec((H, qkv_n), lambda b: (0, 0)),
        pl.BlockSpec((1, qkv_n), lambda b: (0, 0)),
        pl.BlockSpec((n_head * d_v, H), lambda b: (0, 0)),
        pl.BlockSpec((1, H), lambda b: (0, 0)),
        pl.BlockSpec((1, H), lambda b: (0, 0)),
        pl.BlockSpec((1, H), lambda b: (0, 0)),
        pl.BlockSpec((1, 1, T), lambda b: (b, 0, 0)),
        pl.BlockSpec((1, T, 1), lambda b: (b, 0, 0)),
    ]
    args += [p["wqkv"], p["bqkv"], p["fc_w"], p["fc_b"], p["ln_g"], p["ln_b"],
             kmask, rmask]

    return pl.pallas_call(
        kern,
        grid=(B,),
        in_specs=in_specs,
        out_specs=pl.BlockSpec((1, T, H), lambda b: (b, 0, 0)),
        out_shape=jax.ShapeDtypeStruct((B, T, H), F32),
        compiler_params=pltpu.CompilerParams(
            dimension_semantics=("parallel",),
            vmem_limit_bytes=VMEM_LIMIT),
    )(*args)


# ----------------------------------------------------------------------------
# Fused position-wise FFN (conv k1 + ReLU + conv k2 + residual + LN + mask)
# ----------------------------------------------------------------------------
def _ffn_kernel(xp_ref, w1_ref, b1_ref, w2_ref, b2_ref, g_ref, be_ref,
                rmask_ref, o_ref, h_ref=None, *, k1, k2, T, eps):
    p1 = (k1 - 1) // 2
    p2 = (k2 - 1) // 2
    d_inner = w1_ref.shape[-1]
    H = w2_ref.shape[-1]
    xp = xp_ref[0]                                    # (T+2p1, H) f32
    xb = xp.astype(BF16)

    acc = jnp.zeros((T, d_inner), F32)
    for k in range(k1):                               # conv1 (k1-tap)
        acc = acc + jnp.dot(xb[k:k + T, :], w1_ref[k],
                            preferred_element_type=F32)
    h = jnp.maximum(acc + b1_ref[...], 0.0)

    if k2 == 1:                                       # pointwise conv == matmul;
        acc2 = jnp.dot(h.astype(BF16), w2_ref[0],     # no scratch round trip
                       preferred_element_type=F32)
    else:
        h_ref[...] = jnp.zeros_like(h_ref)
        h_ref[p2:p2 + T, :] = h
        acc2 = jnp.zeros((T, H), F32)
        for k in range(k2):                           # conv2 (k2-tap)
            acc2 = acc2 + jnp.dot(h_ref[k:k + T, :].astype(BF16), w2_ref[k],
                                  preferred_element_type=F32)

    y = acc2 + b2_ref[...]
    residual = xp[p1:p1 + T, :]
    y = _layernorm(y + residual, g_ref[...], be_ref[...], eps)
    o_ref[0] = y * (1.0 - rmask_ref[0])


def pallas_ffn(x, p, rmask, k1, k2):
    B, T, H = x.shape
    p1 = (k1 - 1) // 2
    p2 = (k2 - 1) // 2
    d_inner = p["w1"].shape[-1]
    xp = jnp.pad(x, ((0, 0), (p1, p1), (0, 0)))
    kern = functools.partial(_ffn_kernel, k1=k1, k2=k2, T=T, eps=1e-5)
    scratch = [] if k2 == 1 else [pltpu.VMEM((T + 2 * p2, d_inner), F32)]
    return pl.pallas_call(
        kern,
        grid=(B,),
        in_specs=[
            pl.BlockSpec((1, T + 2 * p1, H), lambda b: (b, 0, 0)),
            pl.BlockSpec((k1, H, d_inner), lambda b: (0, 0, 0)),
            pl.BlockSpec((1, d_inner), lambda b: (0, 0)),
            pl.BlockSpec((k2, d_inner, H), lambda b: (0, 0, 0)),
            pl.BlockSpec((1, H), lambda b: (0, 0)),
            pl.BlockSpec((1, H), lambda b: (0, 0)),
            pl.BlockSpec((1, H), lambda b: (0, 0)),
            pl.BlockSpec((1, T, 1), lambda b: (b, 0, 0)),
        ],
        out_specs=pl.BlockSpec((1, T, H), lambda b: (b, 0, 0)),
        out_shape=jax.ShapeDtypeStruct((B, T, H), F32),
        scratch_shapes=scratch,
        compiler_params=pltpu.CompilerParams(
            dimension_semantics=("parallel",),
            vmem_limit_bytes=VMEM_LIMIT),
    )(xp, p["w1"], p["b1"], p["w2"], p["b2"], p["ln_g"], p["ln_b"], rmask)


# ----------------------------------------------------------------------------
# Fused mel_linear + PostNet: mel = x@W+b (output #1), then 5 convs (BN folded,
# tanh on first 4) + mel residual (output #2).  All in one kernel per batch.
# ----------------------------------------------------------------------------
def _mel_postnet_kernel(x_ref, mw_ref, mb_ref,
                        w1_ref, b1_ref, w2_ref, b2_ref, w3_ref, b3_ref,
                        w4_ref, b4_ref, w5_ref, b5_ref,
                        mel_ref, post_ref, sx_ref, sa_ref, sb_ref, *, K, T):
    pad = (K - 1) // 2

    mel = jnp.dot(x_ref[0].astype(BF16), mw_ref[...],
                  preferred_element_type=F32) + mb_ref[...]
    mel_ref[0] = mel                                  # output #1: mel_linear

    def conv(load, w_ref, b_ref, act):
        cout = w_ref.shape[-1]
        acc = jnp.zeros((T, cout), F32)
        for k in range(K):
            acc = acc + jnp.dot(load(k), w_ref[k], preferred_element_type=F32)
        acc = acc + b_ref[...]
        return jnp.tanh(acc) if act else acc

    sx_ref[...] = jnp.zeros_like(sx_ref)              # zero halos once
    sa_ref[...] = jnp.zeros_like(sa_ref)
    sb_ref[...] = jnp.zeros_like(sb_ref)
    sx_ref[pad:pad + T, :] = mel

    h = conv(lambda k: sx_ref[k:k + T, :].astype(BF16), w1_ref, b1_ref, True)
    sa_ref[pad:pad + T, :] = h
    h = conv(lambda k: sa_ref[k:k + T, :].astype(BF16), w2_ref, b2_ref, True)
    sb_ref[pad:pad + T, :] = h
    h = conv(lambda k: sb_ref[k:k + T, :].astype(BF16), w3_ref, b3_ref, True)
    sa_ref[pad:pad + T, :] = h
    h = conv(lambda k: sa_ref[k:k + T, :].astype(BF16), w4_ref, b4_ref, True)
    sb_ref[pad:pad + T, :] = h
    h = conv(lambda k: sb_ref[k:k + T, :].astype(BF16), w5_ref, b5_ref, False)
    post_ref[0] = h + mel                             # output #2: postnet + mel


def pallas_mel_postnet(x, mel_w, mel_b, p_post, K):
    B, T, H = x.shape
    n_mel = mel_w.shape[1]
    pad = (K - 1) // 2
    pd = p_post["convs"][0][0].shape[-1]

    in_specs = [pl.BlockSpec((1, T, H), lambda b: (b, 0, 0)),
                pl.BlockSpec((H, n_mel), lambda b: (0, 0)),
                pl.BlockSpec((1, n_mel), lambda b: (0, 0))]
    args = [x, mel_w, mel_b]
    for (w_, b_) in p_post["convs"]:
        in_specs.append(pl.BlockSpec(w_.shape, lambda b: (0, 0, 0)))
        in_specs.append(pl.BlockSpec(b_.shape, lambda b: (0, 0)))
        args.extend([w_, b_])

    kern = functools.partial(_mel_postnet_kernel, K=K, T=T)
    mel, post = pl.pallas_call(
        kern,
        grid=(B,),
        in_specs=in_specs,
        out_specs=[pl.BlockSpec((1, T, n_mel), lambda b: (b, 0, 0)),
                   pl.BlockSpec((1, T, n_mel), lambda b: (b, 0, 0))],
        out_shape=(jax.ShapeDtypeStruct((B, T, n_mel), F32),
                   jax.ShapeDtypeStruct((B, T, n_mel), F32)),
        scratch_shapes=[pltpu.VMEM((T + 2 * pad, n_mel), F32),
                        pltpu.VMEM((T + 2 * pad, pd), F32),
                        pltpu.VMEM((T + 2 * pad, pd), F32)],
        compiler_params=pltpu.CompilerParams(
            dimension_semantics=("parallel",),
            vmem_limit_bytes=VMEM_LIMIT),
    )(*args)
    return mel, post


# ----------------------------------------------------------------------------
# FastSpeech2 sub-modules (JAX glue around the fused kernels)
# ----------------------------------------------------------------------------
def get_mask_from_lengths(lengths, max_len):
    ids = jnp.arange(max_len)[None, :]
    return ids >= lengths[:, None]          # True == padding


def length_regulate(x, durations, max_len):
    # TODO(synk): data-dependent expand (gather) done in plain JAX, not Pallas.
    cum = jnp.cumsum(durations, axis=1)
    mel_len = cum[:, -1]
    t = jnp.arange(max_len)
    idx = jax.vmap(lambda c: jnp.searchsorted(c, t, side="right"))(cum)
    valid = t[None, :] < mel_len[:, None]
    idx = jnp.minimum(idx, x.shape[1] - 1)
    out = jnp.take_along_axis(x, idx[:, :, None], axis=1)
    out = jnp.where(valid[:, :, None], out, 0.0)
    return out, mel_len


def variance_adaptor(p, cfg, x, src_mask, mel_mask, max_mel_len,
                     p_targets, e_targets, d_targets):
    K = cfg["vp_kernel"]
    rmask = src_mask[:, :, None].astype(F32)           # (B, T, 1)

    log_d_pred = pallas_variance_predictor(x, p["duration_predictor"], rmask, K)

    p_pred = pallas_variance_predictor(x, p["pitch_predictor"], rmask, K)
    # TODO(synk): bucketize + embedding lookup (data-dependent gather) stays in JAX.
    p_idx = jnp.searchsorted(p["pitch_bins"], p_targets, side="left")
    x = x + jnp.take(p["pitch_embedding"], p_idx, axis=0)

    e_pred = pallas_variance_predictor(x, p["energy_predictor"], rmask, K)
    e_idx = jnp.searchsorted(p["energy_bins"], e_targets, side="left")
    x = x + jnp.take(p["energy_embedding"], e_idx, axis=0)

    x, mel_len = length_regulate(x, d_targets, max_mel_len)
    d_rounded = d_targets                               # useGT=True path
    return x, p_pred, e_pred, log_d_pred, d_rounded, mel_len, mel_mask


def decoder(p, cfg, x, mask):
    B, T, H = x.shape
    pos = p["pos_enc"][:T]                              # (T, H)
    kmask = mask[:, None, :].astype(F32)                # (B, 1, T)
    rmask = mask[:, :, None].astype(F32)                # (B, T, 1)
    if not p["layers"]:                                 # degenerate config
        return x + pos[None], mask
    for li, layer in enumerate(p["layers"]):
        x = pallas_mha(x, layer["attn"], kmask, rmask,
                       cfg["n_head"], cfg["d_k"], cfg["d_v"],
                       pos=pos if li == 0 else None)    # pos-enc fused in layer 0
        x = pallas_ffn(x, layer["ffn"], rmask,
                       cfg["fft_kernel"][0], cfg["fft_kernel"][1])
    return x, mask


def fastspeech2_forward(params, cfg, speakers, feature, src_lens, max_src_len,
                        mel_lens, max_mel_len, p_targets, e_targets, d_targets,
                        emotions):
    src_masks = get_mask_from_lengths(src_lens, max_src_len)
    mel_masks = get_mask_from_lengths(mel_lens, max_mel_len)

    output = feature
    (output, p_pred, e_pred, log_d_pred, d_rounded,
     mel_lens_out, mel_masks) = variance_adaptor(
        params["variance_adaptor"], cfg, output, src_masks, mel_masks,
        max_mel_len, p_targets, e_targets, d_targets)

    output, mel_masks = decoder(params["decoder"], cfg, output, mel_masks)

    mel, postnet_output = pallas_mel_postnet(
        output, params["mel_linear_w"], params["mel_linear_b"],
        params["postnet"], cfg["postnet_kernel"])

    return (mel, postnet_output, p_pred, e_pred, log_d_pred, d_rounded,
            src_masks, mel_masks, src_lens, mel_lens_out)


# ----------------------------------------------------------------------------
# Deterministic parameter init (kernel-ready layouts, pre-cast to bf16)
# ----------------------------------------------------------------------------
class KeyGen:
    def __init__(self, key):
        self.key = key

    def __call__(self):
        self.key, k = jax.random.split(self.key)
        return k


def sinusoid_table(n_position, d_hid):
    pos = jnp.arange(n_position)[:, None].astype(F32)
    i = jnp.arange(d_hid)[None, :]
    angle = pos / jnp.power(10000.0, 2.0 * (i // 2) / d_hid)
    return jnp.where(i % 2 == 0, jnp.sin(angle), jnp.cos(angle)).astype(F32)


def init_params(key, cfg):
    kg = KeyGen(key)
    H = cfg["hidden"]
    F_ = cfg["vp_filter"]
    K = cfg["vp_kernel"]
    nb = cfg["n_bins"]
    n_mel = cfg["n_mel"]
    nh, dk, dv = cfg["n_head"], cfg["d_k"], cfg["d_v"]

    def conv_w(k, cin, cout, scale=0.05):
        return (jax.random.normal(kg(), (k, cin, cout), F32) * scale).astype(BF16)

    def dense_w(din, dout, scale=0.05):
        return (jax.random.normal(kg(), (din, dout), F32) * scale).astype(BF16)

    def bias(n, scale=0.01):
        return jax.random.normal(kg(), (1, n), F32) * scale

    def ln(n):
        return jnp.ones((1, n), F32), jnp.zeros((1, n), F32)

    def vp():
        g1, b1 = ln(F_)
        g2, b2 = ln(F_)
        return dict(w1=conv_w(K, H, F_), b1=bias(F_), ln1_g=g1, ln1_b=b1,
                    w2=conv_w(K, F_, F_), b2=bias(F_), ln2_g=g2, ln2_b=b2,
                    lin_w=dense_w(F_, 1), lin_b=bias(1))

    va = dict(duration_predictor=vp(), pitch_predictor=vp(),
              energy_predictor=vp(),
              pitch_bins=jnp.linspace(-1.0, 1.0, nb - 1),
              energy_bins=jnp.linspace(-1.0, 1.0, nb - 1),
              pitch_embedding=jax.random.normal(kg(), (nb, H), F32) * 0.05,
              energy_embedding=jax.random.normal(kg(), (nb, H), F32) * 0.05)

    layers = []
    for _ in range(cfg["n_layers"]):
        g, b = ln(H)
        attn = dict(wqkv=dense_w(H, nh * (2 * dk + dv)),   # fused Q|K|V proj
                    bqkv=bias(nh * (2 * dk + dv)),
                    fc_w=dense_w(nh * dv, H), fc_b=bias(H),
                    ln_g=g, ln_b=b)
        g2, b2 = ln(H)
        k1, k2 = cfg["fft_kernel"]
        ffn = dict(w1=conv_w(k1, H, cfg["d_inner"]), b1=bias(cfg["d_inner"]),
                   w2=conv_w(k2, cfg["d_inner"], H), b2=bias(H),
                   ln_g=g2, ln_b=b2)
        layers.append(dict(attn=attn, ffn=ffn))
    dec = dict(layers=layers, pos_enc=sinusoid_table(cfg["max_seq_len"] + 1, H))

    mel_w = dense_w(H, n_mel)
    mel_b = bias(n_mel)

    # PostNet: eval-mode BatchNorm1d (mean=0, var=1) folded into conv weights.
    pd, pk = cfg["postnet_dim"], cfg["postnet_kernel"]
    chans = [(n_mel, pd), (pd, pd), (pd, pd), (pd, pd), (pd, n_mel)]
    convs = []
    for (cin, cout) in chans:
        w = jax.random.normal(kg(), (pk, cin, cout), F32) * 0.05
        b = jax.random.normal(kg(), (1, cout), F32) * 0.01
        gamma = 1.0 + 0.1 * jax.random.normal(kg(), (cout,), F32)
        beta = 0.01 * jax.random.normal(kg(), (cout,), F32)
        scale = gamma * jax.lax.rsqrt(jnp.ones((cout,), F32) + 1e-5)
        w_eff = (w * scale[None, None, :]).astype(BF16)
        b_eff = b * scale[None, :] + beta[None, :]
        convs.append((w_eff, b_eff))

    return dict(variance_adaptor=va, decoder=dec,
                mel_linear_w=mel_w, mel_linear_b=mel_b,
                postnet=dict(convs=convs))


# ----------------------------------------------------------------------------
if __name__ == "__main__":
    cfg = dict(hidden=32, n_head=2, d_k=16, d_v=16, d_inner=64, fft_kernel=(9, 1),
               n_layers=2, vp_filter=32, vp_kernel=3, n_bins=8, n_mel=16,
               postnet_dim=32, postnet_kernel=5, max_seq_len=64)

    B, T_src = 2, 8
    key = jax.random.PRNGKey(0)
    kparam, kfeat, kp, ke, kd = jax.random.split(key, 5)

    params = init_params(kparam, cfg)

    feature = jax.random.normal(kfeat, (B, T_src, cfg["hidden"]), F32)
    src_lens = jnp.array([8, 6], jnp.int32)
    max_src_len = T_src
    src_mask = get_mask_from_lengths(src_lens, max_src_len)

    d_targets = jax.random.randint(kd, (B, T_src), 1, 4)
    d_targets = jnp.where(src_mask, 0, d_targets).astype(jnp.int32)
    mel_lens = jnp.sum(d_targets, axis=1).astype(jnp.int32)
    max_mel_len = int(jnp.max(mel_lens))

    p_targets = jnp.where(src_mask, 0.0,
                          jax.random.uniform(kp, (B, T_src), minval=-1.0, maxval=1.0))
    e_targets = jnp.where(src_mask, 0.0,
                          jax.random.uniform(ke, (B, T_src), minval=-1.0, maxval=1.0))

    speakers = jnp.zeros((B,), jnp.int32)   # multi_speaker=False -> unused
    emotions = jnp.zeros((B,), jnp.int32)   # with_emotion=False  -> unused

    outs = fastspeech2_forward(params, cfg, speakers, feature, src_lens, max_src_len,
                               mel_lens, max_mel_len, p_targets, e_targets, d_targets,
                               emotions)
    jax.block_until_ready(outs)
    assert outs[0].shape == (B, max_mel_len, cfg["n_mel"])
    assert outs[1].shape == (B, max_mel_len, cfg["n_mel"])
    assert jnp.all(jnp.isfinite(outs[0])) and jnp.all(jnp.isfinite(outs[1]))
    print("KERNEL_OK")
</pallas_src>

<mosaic_0001>
module attributes {stable_mosaic.version = 11 : i64} {
  func.func @_vp_kernel(%arg0: i32, %arg1: memref<1x10x32xf32, #tpu.memory_space<vmem>>, %arg2: memref<3x32x32xbf16, #tpu.memory_space<vmem>>, %arg3: memref<1x32xf32, #tpu.memory_space<vmem>>, %arg4: memref<1x32xf32, #tpu.memory_space<vmem>>, %arg5: memref<1x32xf32, #tpu.memory_space<vmem>>, %arg6: memref<3x32x32xbf16, #tpu.memory_space<vmem>>, %arg7: memref<1x32xf32, #tpu.memory_space<vmem>>, %arg8: memref<1x32xf32, #tpu.memory_space<vmem>>, %arg9: memref<1x32xf32, #tpu.memory_space<vmem>>, %arg10: memref<32x1xbf16, #tpu.memory_space<vmem>>, %arg11: memref<1x1xf32, #tpu.memory_space<vmem>>, %arg12: memref<1x8x1xf32, #tpu.memory_space<vmem>>, %arg13: memref<1x8x1xf32, #tpu.memory_space<vmem>>, %arg14: memref<10x32xf32, #tpu.memory_space<vmem>>) attributes {dimension_semantics = [#tpu.dimension_semantics<parallel>], iteration_bounds = array<i64: 2>, scalar_prefetch = 0 : i64, scratch_operands = 1 : i64, tpu.core_type = #tpu.core_type<tc>, window_params = [{transform_indices = @transform_0, window_bounds = array<i64: 1, 10, 32>}, {pipeline_mode = #tpu.pipeline_mode<synchronous>, transform_indices = @transform_1, window_bounds = array<i64: 3, 32, 32>}, {pipeline_mode = #tpu.pipeline_mode<synchronous>, transform_indices = @transform_2, window_bounds = array<i64: 1, 32>}, {pipeline_mode = #tpu.pipeline_mode<synchronous>, transform_indices = @transform_3, window_bounds = array<i64: 1, 32>}, {pipeline_mode = #tpu.pipeline_mode<synchronous>, transform_indices = @transform_4, window_bounds = array<i64: 1, 32>}, {pipeline_mode = #tpu.pipeline_mode<synchronous>, transform_indices = @transform_5, window_bounds = array<i64: 3, 32, 32>}, {pipeline_mode = #tpu.pipeline_mode<synchronous>, transform_indices = @transform_6, window_bounds = array<i64: 1, 32>}, {pipeline_mode = #tpu.pipeline_mode<synchronous>, transform_indices = @transform_7, window_bounds = array<i64: 1, 32>}, {pipeline_mode = #tpu.pipeline_mode<synchronous>, transform_indices = @transform_8, window_bounds = array<i64: 1, 32>}, {pipeline_mode = #tpu.pipeline_mode<synchronous>, transform_indices = @transform_9, window_bounds = array<i64: 32, 1>}, {pipeline_mode = #tpu.pipeline_mode<synchronous>, transform_indices = @transform_10, window_bounds = array<i64: 1, 1>}, {transform_indices = @transform_11, window_bounds = array<i64: 1, 8, 1>}, {transform_indices = @transform_12, window_bounds = array<i64: 1, 8, 1>}]} {
    %c0 = arith.constant 0 : index
    %c0_0 = arith.constant 0 : index
    %c0_1 = arith.constant 0 : index
    %0 = vector.load %arg1[%c0, %c0_0, %c0_1] : memref<1x10x32xf32, #tpu.memory_space<vmem>>, vector<1x10x32xf32>
    %1 = vector.shape_cast %0 : vector<1x10x32xf32> to vector<10x32xf32>
    %2 = arith.truncf %1 : vector<10x32xf32> to vector<10x32xbf16>
    %cst = arith.constant 0.000000e+00 : f32
    %3 = vector.broadcast %cst : f32 to vector<8x32xf32>
    %4 = vector.extract_strided_slice %2 {offsets = [0, 0], sizes = [8, 32], strides = [1, 1]} : vector<10x32xbf16> to vector<8x32xbf16>
    %c0_2 = arith.constant 0 : index
    %c0_3 = arith.constant 0 : index
    %c0_4 = arith.constant 0 : index
    %5 = vector.load %arg2[%c0_2, %c0_3, %c0_4] : memref<3x32x32xbf16, #tpu.memory_space<vmem>>, vector<1x32x32xbf16>
    %6 = vector.shape_cast %5 : vector<1x32x32xbf16> to vector<32x32xbf16>
    %cst_5 = arith.constant dense<0.000000e+00> : vector<8x32xf32>
    %7 = tpu.matmul %4, %6, %cst_5 {dimension_numbers = #tpu.dot_dimension_numbers<[1], [0], [0], [1], [0, 0, 1, 1], [], []>} : vector<8x32xbf16>, vector<32x32xbf16>, vector<8x32xf32> -> vector<8x32xf32>
    %8 = arith.addf %3, %7 : vector<8x32xf32>
    %9 = vector.extract_strided_slice %2 {offsets = [1, 0], sizes = [8, 32], strides = [1, 1]} : vector<10x32xbf16> to vector<8x32xbf16>
    %c1 = arith.constant 1 : index
    %c0_6 = arith.constant 0 : index
    %c0_7 = arith.constant 0 : index
    %10 = vector.load %arg2[%c1, %c0_6, %c0_7] : memref<3x32x32xbf16, #tpu.memory_space<vmem>>, vector<1x32x32xbf16>
    %11 = vector.shape_cast %10 : vector<1x32x32xbf16> to vector<32x32xbf16>
    %cst_8 = arith.constant dense<0.000000e+00> : vector<8x32xf32>
    %12 = tpu.matmul %9, %11, %cst_8 {dimension_numbers = #tpu.dot_dimension_numbers<[1], [0], [0], [1], [0, 0, 1, 1], [], []>} : vector<8x32xbf16>, vector<32x32xbf16>, vector<8x32xf32> -> vector<8x32xf32>
    %13 = arith.addf %8, %12 : vector<8x32xf32>
    %14 = vector.extract_strided_slice %2 {offsets = [2, 0], sizes = [8, 32], strides = [1, 1]} : vector<10x32xbf16> to vector<8x32xbf16>
    %c2 = arith.constant 2 : index
    %c0_9 = arith.constant 0 : index
    %c0_10 = arith.constant 0 : index
    %15 = vector.load %arg2[%c2, %c0_9, %c0_10] : memref<3x32x32xbf16, #tpu.memory_space<vmem>>, vector<1x32x32xbf16>
    %16 = vector.shape_cast %15 : vector<1x32x32xbf16> to vector<32x32xbf16>
    %cst_11 = arith.constant dense<0.000000e+00> : vector<8x32xf32>
    %17 = tpu.matmul %14, %16, %cst_11 {dimension_numbers = #tpu.dot_dimension_numbers<[1], [0], [0], [1], [0, 0, 1, 1], [], []>} : vector<8x32xbf16>, vector<32x32xbf16>, vector<8x32xf32> -> vector<8x32xf32>
    %18 = arith.addf %13, %17 : vector<8x32xf32>
    %c0_12 = arith.constant 0 : index
    %c0_13 = arith.constant 0 : index
    %19 = vector.load %arg3[%c0_12, %c0_13] : memref<1x32xf32, #tpu.memory_space<vmem>>, vector<1x32xf32>
    %20 = vector.broadcast %19 : vector<1x32xf32> to vector<8x32xf32>
    %21 = arith.addf %18, %20 : vector<8x32xf32>
    %cst_14 = arith.constant 0.000000e+00 : f32
    %22 = vector.broadcast %cst_14 : f32 to vector<8x32xf32>
    %23 = arith.maximumf %21, %22 : vector<8x32xf32>
    %c0_15 = arith.constant 0 : index
    %c0_16 = arith.constant 0 : index
    %24 = vector.load %arg4[%c0_15, %c0_16] : memref<1x32xf32, #tpu.memory_space<vmem>>, vector<1x32xf32>
    %c0_17 = arith.constant 0 : index
    %c0_18 = arith.constant 0 : index
    %25 = vector.load %arg5[%c0_17, %c0_18] : memref<1x32xf32, #tpu.memory_space<vmem>>, vector<1x32xf32>
    %cst_19 = arith.constant dense<0.000000e+00> : vector<8xf32>
    %26 = vector.multi_reduction <add>, %23, %cst_19 [1] : vector<8x32xf32> to vector<8xf32>
    %27 = vector.shape_cast %26 : vector<8xf32> to vector<8x1xf32>
    %cst_20 = arith.constant 3.200000e+01 : f32
    %28 = vector.broadcast %cst_20 : f32 to vector<8x1xf32>
    %29 = arith.divf %27, %28 : vector<8x1xf32>
    %30 = vector.broadcast %29 : vector<8x1xf32> to vector<8x32xf32>
    %31 = arith.subf %23, %30 : vector<8x32xf32>
    %32 = arith.mulf %31, %31 : vector<8x32xf32>
    %cst_21 = arith.constant dense<0.000000e+00> : vector<8xf32>
    %33 = vector.multi_reduction <add>, %32, %cst_21 [1] : vector<8x32xf32> to vector<8xf32>
    %34 = vector.shape_cast %33 : vector<8xf32> to vector<8x1xf32>
    %cst_22 = arith.constant 3.200000e+01 : f32
    %35 = vector.broadcast %cst_22 : f32 to vector<8x1xf32>
    %36 = arith.divf %34, %35 : vector<8x1xf32>
    %37 = vector.broadcast %29 : vector<8x1xf32> to vector<8x32xf32>
    %38 = arith.subf %23, %37 : vector<8x32xf32>
    %cst_23 = arith.constant 9.99999974E-6 : f32
    %39 = vector.broadcast %cst_23 : f32 to vector<8x1xf32>
    %40 = arith.addf %36, %39 : vector<8x1xf32>
    %41 = math.rsqrt %40 : vector<8x1xf32>
    %42 = vector.broadcast %41 : vector<8x1xf32> to vector<8x32xf32>
    %43 = arith.mulf %38, %42 : vector<8x32xf32>
    %44 = vector.broadcast %24 : vector<1x32xf32> to vector<8x32xf32>
    %45 = arith.mulf %43, %44 : vector<8x32xf32>
    %46 = vector.broadcast %25 : vector<1x32xf32> to vector<8x32xf32>
    %47 = arith.addf %45, %46 : vector<8x32xf32>
    %cst_24 = arith.constant 0.000000e+00 : f32
    %48 = vector.broadcast %cst_24 : f32 to vector<10x32xf32>
    %c0_25 = arith.constant 0 : index
    %c0_26 = arith.constant 0 : index
    %49 = vector.load %arg14[%c0_25, %c0_26] : memref<10x32xf32, #tpu.memory_space<vmem>>, vector<10x32xf32>
    tpu.vector_store %arg14[%c0_25, %c0_26], %48 {strides = array<i32>} : memref<10x32xf32, #tpu.memory_space<vmem>>, vector<10x32xf32>,
    %c1_27 = arith.constant 1 : index
    %c0_28 = arith.constant 0 : index
    %50 = vector.load %arg14[%c1_27, %c0_28] : memref<10x32xf32, #tpu.memory_space<vmem>>, vector<8x32xf32>
    tpu.vector_store %arg14[%c1_27, %c0_28], %47 {strides = array<i32>} : memref<10x32xf32, #tpu.memory_space<vmem>>, vector<8x32xf32>,
    %cst_29 = arith.constant 0.000000e+00 : f32
    %51 = vector.broadcast %cst_29 : f32 to vector<8x32xf32>
    %c0_30 = arith.constant 0 : index
    %c0_31 = arith.constant 0 : index
    %52 = vector.load %arg14[%c0_30, %c0_31] : memref<10x32xf32, #tpu.memory_space<vmem>>, vector<8x32xf32>
    %53 = arith.truncf %52 : vector<8x32xf32> to vector<8x32xbf16>
    %c0_32 = arith.constant 0 : index
    %c0_33 = arith.constant 0 : index
    %c0_34 = arith.constant 0 : index
    %54 = vector.load %arg6[%c0_32, %c0_33, %c0_34] : memref<3x32x32xbf16, #tpu.memory_space<vmem>>, vector<1x32x32xbf16>
    %55 = vector.shape_cast %54 : vector<1x32x32xbf16> to vector<32x32xbf16>
    %cst_35 = arith.constant dense<0.000000e+00> : vector<8x32xf32>
    %56 = tpu.matmul %53, %55, %cst_35 {dimension_numbers = #tpu.dot_dimension_numbers<[1], [0], [0], [1], [0, 0, 1, 1], [], []>} : vector<8x32xbf16>, vector<32x32xbf16>, vector<8x32xf32> -> vector<8x32xf32>
    %57 = arith.addf %51, %56 : vector<8x32xf32>
    %c1_36 = arith.constant 1 : index
    %c0_37 = arith.constant 0 : index
    %58 = vector.load %arg14[%c1_36, %c0_37] : memref<10x32xf32, #tpu.memory_space<vmem>>, vector<8x32xf32>
    %59 = arith.truncf %58 : vector<8x32xf32> to vector<8x32xbf16>
    %c1_38 = arith.constant 1 : index
    %c0_39 = arith.constant 0 : index
    %c0_40 = arith.constant 0 : index
    %60 = vector.load %arg6[%c1_38, %c0_39, %c0_40] : memref<3x32x32xbf16, #tpu.memory_space<vmem>>, vector<1x32x32xbf16>
    %61 = vector.shape_cast %60 : vector<1x32x32xbf16> to vector<32x32xbf16>
    %cst_41 = arith.constant dense<0.000000e+00> : vector<8x32xf32>
    %62 = tpu.matmul %59, %61, %cst_41 {dimension_numbers = #tpu.dot_dimension_numbers<[1], [0], [0], [1], [0, 0, 1, 1], [], []>} : vector<8x32xbf16>, vector<32x32xbf16>, vector<8x32xf32> -> vector<8x32xf32>
    %63 = arith.addf %57, %62 : vector<8x32xf32>
    %c2_42 = arith.constant 2 : index
    %c0_43 = arith.constant 0 : index
    %64 = vector.load %arg14[%c2_42, %c0_43] : memref<10x32xf32, #tpu.memory_space<vmem>>, vector<8x32xf32>
    %65 = arith.truncf %64 : vector<8x32xf32> to vector<8x32xbf16>
    %c2_44 = arith.constant 2 : index
    %c0_45 = arith.constant 0 : index
    %c0_46 = arith.constant 0 : index
    %66 = vector.load %arg6[%c2_44, %c0_45, %c0_46] : memref<3x32x32xbf16, #tpu.memory_space<vmem>>, vector<1x32x32xbf16>
    %67 = vector.shape_cast %66 : vector<1x32x32xbf16> to vector<32x32xbf16>
    %cst_47 = arith.constant dense<0.000000e+00> : vector<8x32xf32>
    %68 = tpu.matmul %65, %67, %cst_47 {dimension_numbers = #tpu.dot_dimension_numbers<[1], [0], [0], [1], [0, 0, 1, 1], [], []>} : vector<8x32xbf16>, vector<32x32xbf16>, vector<8x32xf32> -> vector<8x32xf32>
    %69 = arith.addf %63, %68 : vector<8x32xf32>
    %c0_48 = arith.constant 0 : index
    %c0_49 = arith.constant 0 : index
    %70 = vector.load %arg7[%c0_48, %c0_49] : memref<1x32xf32, #tpu.memory_space<vmem>>, vector<1x32xf32>
    %71 = vector.broadcast %70 : vector<1x32xf32> to vector<8x32xf32>
    %72 = arith.addf %69, %71 : vector<8x32xf32>
    %cst_50 = arith.constant 0.000000e+00 : f32
    %73 = vector.broadcast %cst_50 : f32 to vector<8x32xf32>
    %74 = arith.maximumf %72, %73 : vector<8x32xf32>
    %c0_51 = arith.constant 0 : index
    %c0_52 = arith.constant 0 : index
    %75 = vector.load %arg8[%c0_51, %c0_52] : memref<1x32xf32, #tpu.memory_space<vmem>>, vector<1x32xf32>
    %c0_53 = arith.constant 0 : index
    %c0_54 = arith.constant 0 : index
    %76 = vector.load %arg9[%c0_53, %c0_54] : memref<1x32xf32, #tpu.memory_space<vmem>>, vector<1x32xf32>
    %cst_55 = arith.constant dense<0.000000e+00> : vector<8xf32>
    %77 = vector.multi_reduction <add>, %74, %cst_55 [1] : vector<8x32xf32> to vector<8xf32>
    %78 = vector.shape_cast %77 : vector<8xf32> to vector<8x1xf32>
    %cst_56 = arith.constant 3.200000e+01 : f32
    %79 = vector.broadcast %cst_56 : f32 to vector<8x1xf32>
    %80 = arith.divf %78, %79 : vector<8x1xf32>
    %81 = vector.broadcast %80 : vector<8x1xf32> to vector<8x32xf32>
    %82 = arith.subf %74, %81 : vector<8x32xf32>
    %83 = arith.mulf %82, %82 : vector<8x32xf32>
    %cst_57 = arith.constant dense<0.000000e+00> : vector<8xf32>
    %84 = vector.multi_reduction <add>, %83, %cst_57 [1] : vector<8x32xf32> to vector<8xf32>
    %85 = vector.shape_cast %84 : vector<8xf32> to vector<8x1xf32>
    %cst_58 = arith.constant 3.200000e+01 : f32
    %86 = vector.broadcast %cst_58 : f32 to vector<8x1xf32>
    %87 = arith.divf %85, %86 : vector<8x1xf32>
    %88 = vector.broadcast %80 : vector<8x1xf32> to vector<8x32xf32>
    %89 = arith.subf %74, %88 : vector<8x32xf32>
    %cst_59 = arith.constant 9.99999974E-6 : f32
    %90 = vector.broadcast %cst_59 : f32 to vector<8x1xf32>
    %91 = arith.addf %87, %90 : vector<8x1xf32>
    %92 = math.rsqrt %91 : vector<8x1xf32>
    %93 = vector.broadcast %92 : vector<8x1xf32> to vector<8x32xf32>
    %94 = arith.mulf %89, %93 : vector<8x32xf32>
    %95 = vector.broadcast %75 : vector<1x32xf32> to vector<8x32xf32>
    %96 = arith.mulf %94, %95 : vector<8x32xf32>
    %97 = vector.broadcast %76 : vector<1x32xf32> to vector<8x32xf32>
    %98 = arith.addf %96, %97 : vector<8x32xf32>
    %99 = arith.truncf %98 : vector<8x32xf32> to vector<8x32xbf16>
    %c0_60 = arith.constant 0 : index
    %c0_61 = arith.constant 0 : index
    %100 = vector.load %arg10[%c0_60, %c0_61] : memref<32x1xbf16, #tpu.memory_space<vmem>>, vector<32x1xbf16>
    %cst_62 = arith.constant dense<0.000000e+00> : vector<8x1xf32>
    %101 = tpu.matmul %99, %100, %cst_62 {dimension_numbers = #tpu.dot_dimension_numbers<[1], [0], [0], [1], [0, 0, 1, 1], [], []>} : vector<8x32xbf16>, vector<32x1xbf16>, vector<8x1xf32> -> vector<8x1xf32>
    %c0_63 = arith.constant 0 : index
    %c0_64 = arith.constant 0 : index
    %102 = vector.load %arg11[%c0_63, %c0_64] : memref<1x1xf32, #tpu.memory_space<vmem>>, vector<1x1xf32>
    %103 = vector.broadcast %102 : vector<1x1xf32> to vector<8x1xf32>
    %104 = arith.addf %101, %103 : vector<8x1xf32>
    %c0_65 = arith.constant 0 : index
    %c0_66 = arith.constant 0 : index
    %c0_67 = arith.constant 0 : index
    %105 = vector.load %arg12[%c0_65, %c0_66, %c0_67] : memref<1x8x1xf32, #tpu.memory_space<vmem>>, vector<1x8x1xf32>
    %106 = vector.shape_cast %105 : vector<1x8x1xf32> to vector<8x1xf32>
    %cst_68 = arith.constant 1.000000e+00 : f32
    %107 = vector.broadcast %cst_68 : f32 to vector<8x1xf32>
    %108 = arith.subf %107, %106 : vector<8x1xf32>
    %109 = arith.mulf %104, %108 : vector<8x1xf32>
    %c0_69 = arith.constant 0 : index
    %c0_70 = arith.constant 0 : index
    %c0_71 = arith.constant 0 : index
    %110 = vector.load %arg13[%c0_69, %c0_70, %c0_71] : memref<1x8x1xf32, #tpu.memory_space<vmem>>, vector<1x8x1xf32>
    %111 = vector.shape_cast %110 : vector<1x8x1xf32> to vector<8x1xf32>
    %112 = vector.shape_cast %109 : vector<8x1xf32> to vector<1x8x1xf32>
    tpu.vector_store %arg13[%c0_69, %c0_70, %c0_71], %112 {strides = array<i32>} : memref<1x8x1xf32, #tpu.memory_space<vmem>>, vector<1x8x1xf32>,
    return
  }
  func.func @transform_0(%arg0: i32) -> (i32, i32, i32) {
    %c0_i32 = arith.constant 0 : i32
    %c0_i32_0 = arith.constant 0 : i32
    %c0_i32_1 = arith.constant 0 : i32
    return %arg0, %c0_i32, %c0_i32_0 : i32, i32, i32
  }
  func.func @transform_1(%arg0: i32) -> (i32, i32, i32) {
    %c0_i32 = arith.constant 0 : i32
    %c0_i32_0 = arith.constant 0 : i32
    %c0_i32_1 = arith.constant 0 : i32
    %c0_i32_2 = arith.constant 0 : i32
    return %c0_i32, %c0_i32_0, %c0_i32_1 : i32, i32, i32
  }
  func.func @transform_2(%arg0: i32) -> (i32, i32) {
    %c0_i32 = arith.constant 0 : i32
    %c0_i32_0 = arith.constant 0 : i32
    %c0_i32_1 = arith.constant 0 : i32
    return %c0_i32, %c0_i32_0 : i32, i32
  }
  func.func @transform_3(%arg0: i32) -> (i32, i32) {
    %c0_i32 = arith.constant 0 : i32
    %c0_i32_0 = arith.constant 0 : i32
    %c0_i32_1 = arith.constant 0 : i32
    return %c0_i32, %c0_i32_0 : i32, i32
  }
  func.func @transform_4(%arg0: i32) -> (i32, i32) {
    %c0_i32 = arith.constant 0 : i32
    %c0_i32_0 = arith.constant 0 : i32
    %c0_i32_1 = arith.constant 0 : i32
    return %c0_i32, %c0_i32_0 : i32, i32
  }
  func.func @transform_5(%arg0: i32) -> (i32, i32, i32) {
    %c0_i32 = arith.constant 0 : i32
    %c0_i32_0 = arith.constant 0 : i32
    %c0_i32_1 = arith.constant 0 : i32
    %c0_i32_2 = arith.constant 0 : i32
    return %c0_i32, %c0_i32_0, %c0_i32_1 : i32, i32, i32
  }
  func.func @transform_6(%arg0: i32) -> (i32, i32) {
    %c0_i32 = arith.constant 0 : i32
    %c0_i32_0 = arith.constant 0 : i32
    %c0_i32_1 = arith.constant 0 : i32
    return %c0_i32, %c0_i32_0 : i32, i32
  }
  func.func @transform_7(%arg0: i32) -> (i32, i32) {
    %c0_i32 = arith.constant 0 : i32
    %c0_i32_0 = arith.constant 0 : i32
    %c0_i32_1 = arith.constant 0 : i32
    return %c0_i32, %c0_i32_0 : i32, i32
  }
  func.func @transform_8(%arg0: i32) -> (i32, i32) {
    %c0_i32 = arith.constant 0 : i32
    %c0_i32_0 = arith.constant 0 : i32
    %c0_i32_1 = arith.constant 0 : i32
    return %c0_i32, %c0_i32_0 : i32, i32
  }
  func.func @transform_9(%arg0: i32) -> (i32, i32) {
    %c0_i32 = arith.constant 0 : i32
    %c0_i32_0 = arith.constant 0 : i32
    %c0_i32_1 = arith.constant 0 : i32
    return %c0_i32, %c0_i32_0 : i32, i32
  }
  func.func @transform_10(%arg0: i32) -> (i32, i32) {
    %c0_i32 = arith.constant 0 : i32
    %c0_i32_0 = arith.constant 0 : i32
    %c0_i32_1 = arith.constant 0 : i32
    return %c0_i32, %c0_i32_0 : i32, i32
  }
  func.func @transform_11(%arg0: i32) -> (i32, i32, i32) {
    %c0_i32 = arith.constant 0 : i32
    %c0_i32_0 = arith.constant 0 : i32
    %c0_i32_1 = arith.constant 0 : i32
    return %arg0, %c0_i32, %c0_i32_0 : i32, i32, i32
  }
  func.func @transform_12(%arg0: i32) -> (i32, i32, i32) {
    %c0_i32 = arith.constant 0 : i32
    %c0_i32_0 = arith.constant 0 : i32
    %c0_i32_1 = arith.constant 0 : i32
    return %arg0, %c0_i32, %c0_i32_0 : i32, i32, i32
  }
}

</mosaic_0001>

<bundles_post_ra>
// kernel: tpu_custom_call.1
= control target key start
LH: loop header
LB: loop body
LE: loop exit
PB: predicated region body
PF: predicated region fallthrough
CT: control target
= control target key end

     0   :  { %s1215_s0 = inlined_call_operand.vmem [shape: f32[2,10,32], index: 0, kind: input, shape index: {}]   ;;  %s1216_s1 = inlined_call_operand.vmem [shape: bf16[3,32,32], index: 1, kind: input, shape index: {}]   ;;  %s1217_s2 = inlined_call_operand.vmem [shape: f32[1,32], index: 2, kind: input, shape index: {}]   ;;  %s1218_s3 = inlined_call_operand.vmem [shape: f32[1,32], index: 3, kind: input, shape index: {}]   ;;  %s1219_s4 = inlined_call_operand.vmem [shape: f32[1,32], index: 4, kind: input, shape index: {}]   ;;  %s1220_s5 = inlined_call_operand.hbm [shape: bf16[3,32,32], index: 5, kind: input, shape index: {}]   ;;  %s1221_s6 = inlined_call_operand.vmem [shape: f32[1,32], index: 6, kind: input, shape index: {}]   ;;  %s1222_s7 = inlined_call_operand.vmem [shape: f32[1,32], index: 7, kind: input, shape index: {}]   ;;  %s1223_s8 = inlined_call_operand.vmem [shape: f32[1,32], index: 8, kind: input, shape index: {}]   ;;  %s1224_s9 = inlined_call_operand.vmem [shape: bf16[32,1], index: 9, kind: input, shape index: {}]   ;;  %s1225_s10 = inlined_call_operand.<no memory space> [shape: f32[1,1], index: 10, kind: input, shape index: {}]   ;;  %s1226_s11 = inlined_call_operand.vmem [shape: f32[2,8,1], index: 11, kind: input, shape index: {}]   ;;  %s1227_s12 = inlined_call_operand.vmem [shape: f32[2,8,1], index: 12, kind: output, shape index: {}]  }
   0x1   :  { %v17_v0 = vstv %s1225_s10 }
   0x2   :  { %18 = vst [vmem:[#allocation3] sm:$0x1] %v17_v0 }
   0x3   :  { %19 = vsyncpa [#allocation5], 0  ;;  %s1127_s23 = smov 0  }
   0x4 LB: > { %s341_s26 = sshll.u32 %s1220_s5, 4  ;;  %s877_s27 = sadd.s32 4294967295, %s1052_s23   ;;  %s1052_s23 = sphi %s1127_s23, %s25_s23   ;;  %s342_s26 = int_to_ptr.hbm [resolvable:$true] %s341_s26 }
   0x5   : > { %p879_p0 = scmp.ge.s32.totalorder %s1052_s23, 1  ;;  %p318_p1 = scmp.lt.s32.totalorder %s1052_s23, 3 }
   0x6   : > { %p984_p2 = scmp.eq.s32.totalorder %s877_s27, 0  ;;  %s1054_s10 = smov [#allocation4]  }
   0x7   : > { %p319_p3 = pnand %p879_p0, %p318_p1  ;;  %s343_s28 = sshll.u32 %s1054_s10, 4  ;;  %s344_s28 = int_to_ptr.vmem [resolvable:$true] %s343_s28 }
   0x8   : > { %s1055_s29 = smov 64   ;;  %s1056_s30 = smov 4  }
   0x9   : > { %p980_p4 = pneg %p319_p3  ;;  %389 = sbr.rel (%p319_p3) target bundleno = 995 (0x3e3), region = 68 }
   0xb   : > { %p981_p5 = pnand %p984_p2, %p980_p4 }
   0xd   : > { %983 = dma.hbm_to_vmem [thread:$0]  (!%p981_p5), %s342_s26, 768, %s344_s28, [#allocation5], %s1055_s29, %s1055_s29, %s1056_s30  }
   0xe   : > { %1047 = dma.done.wait (%p984_p2), [#allocation5], 768  }
   0xf   : > { %1049 = vsyncadd (%p984_p2), [#allocation5], 4294966528  ;;  %p435_p6 = scmp.lt.s32.totalorder %s877_s27, 1  ;;  %v963_v1 = vld [vmem:[%s1216_s1 + $0x8] sm:$0xff]  ;;  %v965_v3 = vld [vmem:[%s1216_s1 + $0x18] sm:$0xff]  ;;  %vm486_vm0 = vcmask 261120  }
  0x10   : > { %v967_v2 = vld [vmem:[%s1216_s1 + $0x28] sm:$0xff]  ;;  %v962_v4 = vld [vmem:[%s1216_s1] sm:$0xff]  ;;  %v964_v6 = vld [vmem:[%s1216_s1 + $0x10] sm:$0xff]  ;;  %524 = vmatpush.bf16.msra.mxu1 %v963_v1  ;;  %496 = vmatpush.bf16.msra.mxu0 %v965_v3  ;;  %v1057_v31 = vmov 32.0   ;;  %vm612_vm1 = vcmask 254976   ;;  %v1058_v32 = vmov 0.0  }
  0x11   : > { %s1229_s27 = smov (!%p435_p6, %s877_s27), 1  ;;  %v966_v5 = vld [vmem:[%s1216_s1 + $0x20] sm:$0xff]  ;;  %558 = vmatpush.bf16.msra.mxu2 %v967_v2  ;;  %1006 = vrcp.f32 %v1057_v31  ;;  %611 = vst.msk [vmem:[#allocation2] sm:$0xff] %vm486_vm0, %v1058_v32  ;;  %v971_v46 = vld [vmem:[#allocation4 + $0x18] sm:$0xff]  ;;  %v968_v47 = vld [vmem:[#allocation4] sm:$0xff]  ;;  %vm798_vm9 = vcmask 7168  }
  0x12   : > { %s961_s13 = sshll.u32 %s1229_s27, 4  ;;  %v999_v22 = vld [vmem:[%s1217_s2] ss:$0 sm:$0xff]  ;;  %613 = vst.msk [vmem:[#allocation2 + $0x8] sm:$0x3] %vm612_vm1, %v1058_v32  ;;  %v972_v48 = vld [vmem:[#allocation4 + $0x20] sm:$0xff]  ;;  %649 = vmatpush.bf16.msra.mxu3 %v971_v46 }
  0x13   : > { %s439_s16 = scalar_lea.vmem %s1215_s0, %s961_s13  ;;  %v969_v44 = vld [vmem:[#allocation4 + $0x8] sm:$0xff]  ;;  %v970_v50 = vld [vmem:[#allocation4 + $0x10] sm:$0xff]  ;;  %s886_s29 = sshll.u32 %s1229_s27, 3 }
  0x14   : > { %v449_v7 = vld [vmem:[%s439_s16] sm:$0xff]  ;;  %v450_v8 = vld [vmem:[%s439_s16 + $0x8] sm:$0x3]  ;;  %525 = vmatpush.bf16.msra.mxu1 %v962_v4  ;;  %497 = vmatpush.bf16.msra.mxu0 %v964_v6  ;;  %s443_s14 = scalar_lea.vmem %s1226_s11, %s886_s29  ;;  %s447_s17 = scalar_lea.vmem %s1227_s12, %s886_s29 }
  0x15   : > { %v451_v9 = vpack.c.bf16 %v449_v7, %v449_v7  ;;  %v452_v10 = vpack.c.bf16 %v450_v8, %v450_v8  ;;  %559 = vmatpush.bf16.msra.mxu2 %v966_v5  ;;  %v973_v45 = vld [vmem:[#allocation4 + $0x28] sm:$0xff] }
  0x16   : > { %650 = vmatpush.bf16.msra.mxu3 %v970_v50  ;;  %v1000_v59 = vld [vmem:[%s1218_s3] ss:$0 sm:$0xff] }
  0x17   : > { %v464_v11 = vunpack.c.l.b16 %v451_v9  ;;  %v465_v12 = vunpack.c.l.b16 %v452_v10  ;;  %909 = vmatmul.msk.bf16.vlgmr.msra.gmra.mxu1 %vm486_vm0, %v451_v9  ;;  %v1007_v33 = vpop.eup %1006  ;;  %v1001_v61 = vld [vmem:[%s1219_s4] ss:$0 sm:$0xff] }
  0x18   : > { %v578_v34 = vmul.f32 32.0, %v1007_v33  ;;  %vm582_vm2 = vweird.f32 %v1007_v33  ;;  %677 = vmatpush.bf16.msrb.mxu0 %v969_v44  ;;  %712 = vmatpush.bf16.msrb.mxu1 %v973_v45 }
  0x19   : > { %v466_v13 = vpack.c.b16 %v465_v12, %v464_v11  ;;  %v1002_v11 = vld [vmem:[%s1221_s6] ss:$0 sm:$0xff] }
  0x1a   : > { %v579_v35 = vsub.f32 1.0, %v578_v34 }
  0x1b   : > { %v536_v14 = vrot.slane %v466_v13, 1  ;;  %v468_v15 = vshrl.u32 %v466_v13, 16  ;;  %v470_v16 = vshll.u32 %v466_v13, 16 }
  0x1c   : > { %v580_v36 = vmul.f32 %v1007_v33, %v579_v35  ;;  %678 = vmatpush.bf16.msrb.mxu0 %v968_v47  ;;  %713 = vmatpush.bf16.msrb.mxu1 %v972_v48  ;;  %v1003_v35 = vld [vmem:[%s1222_s7] ss:$0 sm:$0xff] }
  0x1d   : > { %922 = vmatmul.msk.bf16.vlgmr.msra.gmra.mxu2 %vm486_vm0, %v536_v14  ;;  %v472_v17 = vrot.slane %v470_v16, 1 }
  0x1e   : > { %v581_v37 = vadd.f32 %v1007_v33, %v580_v36 }
  0x1f   : > { %v473_v18 = vor.u32 %v472_v17, %v468_v15 }
  0x20   : > { %v1170_v38 = vsel %vm582_vm2, %v1007_v33, %v581_v37 }
  0x21   : > { %900 = vmatmul.msk.bf16.vlgmr.msra.gmra.mxu0 %vm486_vm0, %v473_v18 }
  0x94   : > { %v527_v19 = vpop.f32.mrf.mxu1 }
  0x9c   : > { %v529_v24 = vpop.f32.mrf.mxu1 }
  0x9d   : > { %v975_v24 = vld [vmem:[%s1224_s9 + $0x8] sm:$0xff] }
  0x9e   : > { %v499_v20 = vpop.f32.mrf.mxu0  ;;  %788 = vmatpush.bf16.msrb.mxu2 %v975_v24 }
  0x9f   : > { %v528_v21 = vadd.f32 %v527_v19, %v499_v20 }
  0xa0   : > { %v561_v23 = vpop.f32.mrf.mxu2 }
  0xa1   : > { %v565_v25 = vadd.f32 %v561_v23, %v528_v21 }
  0xa3   : > { %v570_v26 = vadd.f32 %v999_v22, %v565_v25  ;;  %v974_v25 = vld [vmem:[%s1224_s9] sm:$0xff] }
  0xa4   : > { %789 = vmatpush.bf16.msrb.mxu2 %v974_v25 }
  0xa5   : > { %v571_v27 = vmax.f32 %v570_v26, 0.0 }
  0xa6   : > { %v501_v28 = vpop.f32.mrf.mxu0 }
  0xa7   : > { %v574_v29 = vsel %vm486_vm0, %v571_v27, 0.0 }
  0xa8   : > { %v563_v30 = vpop.f32.mrf.mxu2  ;;  %575 = vadd.xlane.f32.xlu0 %v574_v29 }
 0x11b   : > { %v576_v39 = vpop.xlane.xlu0 %575 }
 0x11c   : > { %v584_v40 = vmul.f32 %v1170_v38, %v576_v39 }
 0x11e   : > { %v585_v41 = vsub.f32 %v571_v27, %v584_v40 }
 0x120   : > { %v586_v42 = vmul.f32 %v585_v41, %v585_v41 }
 0x122   : > { %v587_v43 = vsel %vm486_vm0, %v586_v42, 0.0  ;;  %v795_v42 = vld [vmem:[%s443_s14] sm:$0xff] }
 0x123   : > { %588 = vadd.xlane.f32.xlu0 %v587_v43  ;;  %v1005_v43 = vld [vmem:[#allocation3] ss:$0 sm:$0xff]  ;;  %v796_v44 = vsub.f32 1.0, %v795_v42 }
 0x196   : > { %v589_v49 = vpop.xlane.xlu0 %588 }
 0x197   : > { %v590_v51 = vmul.f32 %v589_v49, %v1170_v38 }
 0x199   : > { %v591_v52 = vadd.f32 1e-05, %v590_v51 }
 0x19b   : > { %1008 = vrsqrt.f32 %v591_v52  ;;  %vm598_vm4 = vweird.f32 %v591_v52 }
 0x1a1   : > { %v1009_v53 = vpop.eup %1008 }
 0x1a2   : > { %v593_v54 = vmul.f32 %v1009_v53, %v591_v52  ;;  %vm599_vm3 = vweird.f32 %v1009_v53 }
 0x1a3   : > { %vm600_vm5 = vmor %vm598_vm4, %vm599_vm3 }
 0x1a4   : > { %v594_v55 = vmul.f32 %v1009_v53, %v593_v54 }
 0x1a6   : > { %v595_v56 = vmul.f32 0.5, %v594_v55 }
 0x1a8   : > { %v596_v57 = vsub.f32 1.5, %v595_v56 }
 0x1aa   : > { %v597_v58 = vmul.f32 %v1009_v53, %v596_v57 }
 0x1ac   : > { %v601_v60 = vsel %vm600_vm5, %v1009_v53, %v597_v58 }
 0x1ad   : > { %v602_v62 = vmul.f32 %v601_v60, %v585_v41 }
 0x1af   : > { %v606_v63 = vmul.f32 %v1000_v59, %v602_v62 }
 0x1b1   : > { %v610_v0 = vadd.f32 %v1001_v61, %v606_v63 }
 0x1b3   : > { %614 = vst.msk [vmem:[#allocation2 + $0x1] sm:$0xff] %vm486_vm0, %v610_v0 }
 0x1ba   : > { %v621_v1 = vld [vmem:[#allocation2 + $0x1] sm:$0xff] }
 0x1bb   : > { %v615_v2 = vld [vmem:[#allocation2] sm:$0xff]  ;;  %v622_v4 = vpack.c.bf16 %v621_v1, %v621_v1 }
 0x1bc   : > { %v684_v3 = vld [vmem:[#allocation2 + $0x2] sm:$0xff]  ;;  %v616_v5 = vpack.c.bf16 %v615_v2, %v615_v2 }
 0x1bd   : > { %v685_v6 = vpack.c.bf16 %v684_v3, %v684_v3  ;;  %931 = vmatmul.msk.bf16.vlgmr.msra.gmra.mxu3 %vm486_vm0, %v622_v4 }
 0x1be   : > { %940 = vmatmul.msk.bf16.vlgmr.msrb.gmra.mxu0 %vm486_vm0, %v616_v5 }
 0x1bf   : > { %949 = vmatmul.msk.bf16.vlgmr.msrb.gmra.mxu1 %vm486_vm0, %v685_v6 }
 0x23b   : > { %v680_v7 = vpop.f32.mrf.mxu0 }
 0x23c   : > { %v715_v8 = vpop.f32.mrf.mxu1 }
 0x240   : > { %v652_v9 = vpop.f32.mrf.mxu3 }
 0x241   : > { %v681_v10 = vadd.f32 %v680_v7, %v652_v9 }
 0x243   : > { %v682_v12 = vpop.f32.mrf.mxu0  ;;  %v719_v13 = vadd.f32 %v715_v8, %v681_v10 }
 0x244   : > { %v717_v14 = vpop.f32.mrf.mxu1 }
 0x245   : > { %v724_v15 = vadd.f32 %v1002_v11, %v719_v13 }
 0x247   : > { %v725_v16 = vmax.f32 %v724_v15, 0.0 }
 0x248   : > { %v654_v17 = vpop.f32.mrf.mxu3 }
 0x249   : > { %v728_v18 = vsel %vm486_vm0, %v725_v16, 0.0 }
 0x24a   : > { %729 = vadd.xlane.f32.xlu1 %v728_v18 }
 0x2bd   : > { %v730_v19 = vpop.xlane.xlu1 %729 }
 0x2be   : > { %v731_v20 = vmul.f32 %v730_v19, %v1170_v38 }
 0x2c0   : > { %v732_v21 = vsub.f32 %v725_v16, %v731_v20 }
 0x2c2   : > { %v733_v22 = vmul.f32 %v732_v21, %v732_v21 }
 0x2c4   : > { %v734_v23 = vsel %vm486_vm0, %v733_v22, 0.0 }
 0x2c5   : > { %735 = vadd.xlane.f32.xlu1 %v734_v23 }
 0x338   : > { %v736_v26 = vpop.xlane.xlu1 %735 }
 0x339   : > { %v737_v27 = vmul.f32 %v736_v26, %v1170_v38  ;;  %v1004_v38 = vld [vmem:[%s1223_s8] ss:$0 sm:$0xff] }
 0x33b   : > { %v738_v28 = vadd.f32 1e-05, %v737_v27 }
 0x33d   : > { %1010 = vrsqrt.f32 %v738_v28  ;;  %vm745_vm7 = vweird.f32 %v738_v28 }
 0x343   : > { %v1011_v29 = vpop.eup %1010 }
 0x344   : > { %v740_v30 = vmul.f32 %v1011_v29, %v738_v28  ;;  %vm746_vm6 = vweird.f32 %v1011_v29 }
 0x345   : > { %vm747_vm8 = vmor %vm745_vm7, %vm746_vm6 }
 0x346   : > { %v741_v31 = vmul.f32 %v1011_v29, %v740_v30 }
 0x348   : > { %v742_v32 = vmul.f32 0.5, %v741_v31 }
 0x34a   : > { %v743_v33 = vsub.f32 1.5, %v742_v32 }
 0x34c   : > { %v744_v34 = vmul.f32 %v1011_v29, %v743_v33 }
 0x34e   : > { %v748_v36 = vsel %vm747_vm8, %v1011_v29, %v744_v34 }
 0x34f   : > { %v749_v37 = vmul.f32 %v748_v36, %v732_v21 }
 0x351   : > { %v753_v39 = vmul.f32 %v1003_v35, %v749_v37 }
 0x353   : > { %v757_v40 = vadd.f32 %v1004_v38, %v753_v39 }
 0x355   : > { %v758_v41 = vpack.c.bf16 %v757_v40, %v757_v40 }
 0x357   : > { %958 = vmatmul.msk.bf16.vlgmr.msrb.gmra.mxu2 %vm486_vm0, %v758_v41 }
 0x3da   : > { %v791_v45 = vpop.f32.mrf.mxu2 }
 0x3db   : > { %v792_v46 = vadd.f32 %v1005_v43, %v791_v45 }
 0x3dd   : > { %v797_v47 = vmul.f32 %v796_v44, %v792_v46 }
 0x3df   : > { %799 = vst.msk [vmem:[%s447_s17] sm:$0xff] %vm798_vm9, %v797_v47 }
 0x3e2   : > { %v793_v48 = vpop.f32.mrf.mxu2 }
 0x3e3 PF: > { %s25_s23 = sadd.s32 1, %s1052_s23  }
 0x3e4   : > { %p22_p7 = scmp.ge.s32.totalorder %s25_s23, 4  }
 0x3e6   :  { %24 = sbr.rel (!%p22_p7) target bundleno = 4 (0x4), region = 110 }
 0x3eb   :  { %819 = vsyncpa [#allocation5], 1 }
 0x3ec   :  { %821 = vsyncpa [#allocation5 + $0x1], 1 }

</bundles_post_ra>
